<compile_context>
chip_gen: v5e
topology: v5e:2x2
jax: 0.10.0
libtpu: 0.0.40
codegen_flags: <defaults>
</compile_context>

<pallas_src>
import jax
import jax.numpy as jnp
import numpy as np
from jax.experimental import pallas as pl
from jax.experimental.pallas import tpu as pltpu

LN_EPS = 1e-5  # PyTorch nn.LayerNorm default


# --------------------------- init-time weight folding ------------------------

def fold_params(params, patch_size_t):
    """Fold TimeMerging.reduction into the conv weight.  Called ONCE at init.

    conv(red(x)) = patches @ W_comb^T + b_comb, with patch features ordered
    (ki, kj, p, c_raw) where p is the (outer) intra-group time index of TimeMerging v2.
    """
    conv_w = params["conv_w"]                       # (E, C, pz, pz)  OIHW
    E, C, pz, _ = conv_w.shape
    pt = patch_size_t
    hp = jax.lax.Precision.HIGHEST                  # init-time only: f32-exact fold
    wc = jnp.transpose(conv_w, (0, 2, 3, 1))        # (E, ki, kj, c_in)
    red_w = params["red_w"].reshape(C, pt, C)       # (c_in, p, c_raw); cols were p*C + c
    w_comb = jnp.einsum("eijc,cpq->eijpq", wc, red_w, precision=hp)
    w_comb = w_comb.reshape(E, pz * pz * pt * C)    # features ordered (ki, kj, p, c_raw)
    b_comb = params["conv_b"] + jnp.einsum("eijc,c->e", wc, params["red_b"], precision=hp)
    return {
        # (K, E) bf16: single-pass MXU operand, half the resident-weight bytes.
        "w_t": jnp.transpose(w_comb).astype(jnp.bfloat16),
        # (3, E) f32: rows = [bias, ln_gamma, ln_beta] packed into one ref.
        "aff": jnp.stack([b_comb, params["ln_g"], params["ln_b"]], axis=0).astype(jnp.float32),
    }


# ------------------------------- Pallas kernel --------------------------------

def _fused_patch_embed_kernel(p_ref, w_ref, a_ref, o_ref):
    # (tile, K) bf16 @ (K, E) bf16 -> (tile, E) f32 accumulate (one MXU pass).
    y = jnp.dot(p_ref[...], w_ref[...], preferred_element_type=jnp.float32)
    aff = a_ref[...]                                   # (3, E) f32: bias, gamma, beta
    y = y + aff[0:1, :]
    # LayerNorm over the embed (lane) axis, fully in-block, f32.
    mean = jnp.mean(y, axis=-1, keepdims=True)
    var = jnp.mean((y - mean) ** 2, axis=-1, keepdims=True)
    y_hat = (y - mean) * jax.lax.rsqrt(var + LN_EPS)   # rsqrt -> EUP slot (free-ish)
    o_ref[...] = (y_hat * aff[1:2, :] + aff[2:3, :]).astype(o_ref.dtype)


def _tpu_tiling_config():
    """(min_grid_steps, row_cap) per TPU generation.

    Row cap keeps the double-buffered (bf16 input + f32 output) working set at a few
    MiB: well inside v5e's 16 MiB scoped-VMEM default and v7x's 64 MiB physical VMEM.
    min_grid_steps >= 2 on 2-TensorCore parts so the 'parallel' axis feeds both cores.
    """
    kind = ""
    try:
        kind = jax.devices()[0].device_kind.lower()
    except Exception:
        pass
    if "v5 lite" in kind or "v5lite" in kind or "v5e" in kind:
        return 1, 4096        # 1 TC/chip, 16 MiB scoped-VMEM default
    if "v6" in kind or "trillium" in kind:
        return 1, 8192        # 1 TC/chip, 32 MiB scoped-VMEM default
    return 2, 8192            # v7x (2 TCs/chip) or unknown: split work, modest blocks


def _pick_tile_rows(n):
    """Rows-per-block over the position axis (the kernel's sublane axis)."""
    min_steps, cap = _tpu_tiling_config()
    if n % 8 != 0:
        return n                               # full-extent block is always legal
    tile = min(cap, pl.cdiv(n, min_steps))
    tile = max(8, 8 * (tile // 8))             # sublane-aligned
    return min(tile, n)


def fused_patch_embed_pallas(patches_bf16, folded):
    n, k = patches_bf16.shape
    e = folded["w_t"].shape[1]
    tile = _pick_tile_rows(n)
    return pl.pallas_call(
        _fused_patch_embed_kernel,
        out_shape=jax.ShapeDtypeStruct((n, e), jnp.float32),
        grid=(pl.cdiv(n, tile),),
        in_specs=[
            pl.BlockSpec((tile, k), lambda i: (i, 0)),   # bf16 patches (only moving block)
            pl.BlockSpec((k, e), lambda i: (0, 0)),      # folded weight (stays resident)
            pl.BlockSpec((3, e), lambda i: (0, 0)),      # [bias; gamma; beta]
        ],
        out_specs=pl.BlockSpec((tile, e), lambda i: (i, 0)),
        compiler_params=pltpu.CompilerParams(dimension_semantics=("parallel",)),
    )(patches_bf16, folded["w_t"], folded["aff"])


# -------------------------------- Forward pass ---------------------------------

def patch_embed_spatiotemporal_v1(x, folded, patch_size, patch_size_t):
    """x: (B, C, H, W, T)  ->  (B, H//pz, W//pz, T//pt, embed_dim)."""
    B, C, H, W, T = x.shape
    pz, pt = patch_size, patch_size_t
    E = folded["w_t"].shape[1]
    Hp, Wp, t_new = H // pz, W // pz, T // pt

    # Cast FIRST so the XLA gather/transpose below moves bf16 (half the bytes).
    xb = x[..., : t_new * pt].astype(jnp.bfloat16)
    # T splits p-major (pt outer) to match TimeMerging v2's '(p t)' grouping.
    xt = xb.reshape(B, C, Hp, pz, Wp, pz, pt, t_new)
    # Rows = output positions (b, hi, wj, t) so the kernel output reshapes straight to
    # (B, Hp, Wp, t, E) with NO trailing transpose.  Columns = contraction features
    # ordered (ki, kj, p, c_raw) to match fold_params().
    patches = jnp.transpose(xt, (0, 2, 4, 7, 3, 5, 6, 1))
    patches = patches.reshape(B * Hp * Wp * t_new, pz * pz * pt * C)

    out = fused_patch_embed_pallas(patches, folded)          # (n, E) f32
    return out.reshape(B, Hp, Wp, t_new, E)


# ----------------------------- Pure-JAX reference -------------------------------

def reference(x, params, pz, pt):
    B, C, H, W, T = x.shape
    xp = jnp.transpose(x, (0, 2, 3, 4, 1))
    T2 = (T // pt) * pt
    xp = xp[:, :, :, :T2, :]
    t_new = T2 // pt
    xg = xp.reshape(B, H, W, pt, t_new, C)
    xg = jnp.transpose(xg, (0, 1, 2, 4, 3, 5)).reshape(B, H, W, t_new, pt * C)
    red = jnp.einsum("...k,nk->...n", xg, params["red_w"],
                     precision=jax.lax.Precision.HIGHEST) + params["red_b"]
    ci = jnp.transpose(red, (0, 3, 4, 1, 2)).reshape(B * t_new, C, H, W)
    conv = jax.lax.conv_general_dilated(
        ci, params["conv_w"], window_strides=(pz, pz), padding="VALID",
        dimension_numbers=("NCHW", "OIHW", "NCHW"),
        precision=jax.lax.Precision.HIGHEST)
    conv = conv + params["conv_b"][None, :, None, None]
    Hp, Wp = H // pz, W // pz
    y = conv.reshape(B, t_new, -1, Hp, Wp).transpose(0, 3, 4, 1, 2)  # b h w t c
    mean = y.mean(-1, keepdims=True)
    var = ((y - mean) ** 2).mean(-1, keepdims=True)
    return (y - mean) / jnp.sqrt(var + LN_EPS) * params["ln_g"] + params["ln_b"]


# ------------------------------------- Main --------------------------------------

if __name__ == "__main__":
    # num_node=16 (H=W=16), num_frame=8 (T=8), patch_size=4, patch_size_t=2,
    # in_chans=4, embed_dim=32
    B, C, H, W, T = 2, 4, 16, 16, 8
    pz, pt, E = 4, 2, 32

    key = jax.random.PRNGKey(0)
    ks = jax.random.split(key, 7)
    x = jax.random.normal(ks[0], (B, C, H, W, T), jnp.float32)
    params = {
        "conv_w": 0.1 * jax.random.normal(ks[1], (E, C, pz, pz), jnp.float32),
        "conv_b": 0.1 * jax.random.normal(ks[2], (E,), jnp.float32),
        "red_w": 0.1 * jax.random.normal(ks[3], (C, pt * C), jnp.float32),
        "red_b": 0.1 * jax.random.normal(ks[4], (C,), jnp.float32),
        "ln_g": 1.0 + 0.1 * jax.random.normal(ks[5], (E,), jnp.float32),
        "ln_b": 0.1 * jax.random.normal(ks[6], (E,), jnp.float32),
    }

    # Init-time (hoisted out of the forward path): fold TimeMerging into the conv weight.
    folded = fold_params(params, pt)

    fwd = jax.jit(lambda xx, ff: patch_embed_spatiotemporal_v1(xx, ff, pz, pt))
    out = jax.block_until_ready(fwd(x, folded))
    assert out.shape == (B, H // pz, W // pz, T // pt, E), out.shape
    assert out.dtype == jnp.float32, out.dtype

    ref = reference(x, params, pz, pt)
    # Tolerance accounts for the deliberate bf16 (operand) / f32 (accumulate+LN) path.
    np.testing.assert_allclose(np.asarray(out), np.asarray(ref), atol=6e-2, rtol=6e-2)
    print("KERNEL_OK")
</pallas_src>

<mosaic_0001>
module attributes {stable_mosaic.version = 11 : i64} {
  func.func @_fused_patch_embed_kernel(%arg0: i32, %arg1: memref<64x128xbf16, #tpu.memory_space<vmem>>, %arg2: memref<128x32xbf16, #tpu.memory_space<vmem>>, %arg3: memref<3x32xf32, #tpu.memory_space<vmem>>, %arg4: memref<64x32xf32, #tpu.memory_space<vmem>>) attributes {dimension_semantics = [#tpu.dimension_semantics<parallel>], iteration_bounds = array<i64: 2>, scalar_prefetch = 0 : i64, scratch_operands = 0 : i64, tpu.core_type = #tpu.core_type<tc>, window_params = [{transform_indices = @transform_0, window_bounds = array<i64: 64, 128>}, {pipeline_mode = #tpu.pipeline_mode<synchronous>, transform_indices = @transform_1, window_bounds = array<i64: 128, 32>}, {pipeline_mode = #tpu.pipeline_mode<synchronous>, transform_indices = @transform_2, window_bounds = array<i64: 3, 32>}, {transform_indices = @transform_3, window_bounds = array<i64: 64, 32>}]} {
    %c0 = arith.constant 0 : index
    %c0_0 = arith.constant 0 : index
    %0 = vector.load %arg1[%c0, %c0_0] : memref<64x128xbf16, #tpu.memory_space<vmem>>, vector<64x128xbf16>
    %c0_1 = arith.constant 0 : index
    %c0_2 = arith.constant 0 : index
    %1 = vector.load %arg2[%c0_1, %c0_2] : memref<128x32xbf16, #tpu.memory_space<vmem>>, vector<128x32xbf16>
    %cst = arith.constant dense<0.000000e+00> : vector<64x32xf32>
    %2 = tpu.matmul %0, %1, %cst {dimension_numbers = #tpu.dot_dimension_numbers<[1], [0], [0], [1], [0, 0, 1, 1], [], []>} : vector<64x128xbf16>, vector<128x32xbf16>, vector<64x32xf32> -> vector<64x32xf32>
    %c0_3 = arith.constant 0 : index
    %c0_4 = arith.constant 0 : index
    %3 = vector.load %arg3[%c0_3, %c0_4] : memref<3x32xf32, #tpu.memory_space<vmem>>, vector<3x32xf32>
    %4 = vector.extract_strided_slice %3 {offsets = [0, 0], sizes = [1, 32], strides = [1, 1]} : vector<3x32xf32> to vector<1x32xf32>
    %5 = vector.broadcast %4 : vector<1x32xf32> to vector<64x32xf32>
    %6 = arith.addf %2, %5 : vector<64x32xf32>
    %cst_5 = arith.constant dense<0.000000e+00> : vector<64xf32>
    %7 = vector.multi_reduction <add>, %6, %cst_5 [1] : vector<64x32xf32> to vector<64xf32>
    %8 = vector.shape_cast %7 : vector<64xf32> to vector<64x1xf32>
    %cst_6 = arith.constant 3.200000e+01 : f32
    %9 = vector.broadcast %cst_6 : f32 to vector<64x1xf32>
    %10 = arith.divf %8, %9 : vector<64x1xf32>
    %11 = vector.broadcast %10 : vector<64x1xf32> to vector<64x32xf32>
    %12 = arith.subf %6, %11 : vector<64x32xf32>
    %13 = arith.mulf %12, %12 : vector<64x32xf32>
    %cst_7 = arith.constant dense<0.000000e+00> : vector<64xf32>
    %14 = vector.multi_reduction <add>, %13, %cst_7 [1] : vector<64x32xf32> to vector<64xf32>
    %15 = vector.shape_cast %14 : vector<64xf32> to vector<64x1xf32>
    %cst_8 = arith.constant 3.200000e+01 : f32
    %16 = vector.broadcast %cst_8 : f32 to vector<64x1xf32>
    %17 = arith.divf %15, %16 : vector<64x1xf32>
    %18 = vector.broadcast %10 : vector<64x1xf32> to vector<64x32xf32>
    %19 = arith.subf %6, %18 : vector<64x32xf32>
    %cst_9 = arith.constant 9.99999974E-6 : f32
    %20 = vector.broadcast %cst_9 : f32 to vector<64x1xf32>
    %21 = arith.addf %17, %20 : vector<64x1xf32>
    %22 = math.rsqrt %21 : vector<64x1xf32>
    %23 = vector.broadcast %22 : vector<64x1xf32> to vector<64x32xf32>
    %24 = arith.mulf %19, %23 : vector<64x32xf32>
    %25 = vector.extract_strided_slice %3 {offsets = [1, 0], sizes = [1, 32], strides = [1, 1]} : vector<3x32xf32> to vector<1x32xf32>
    %26 = vector.broadcast %25 : vector<1x32xf32> to vector<64x32xf32>
    %27 = arith.mulf %24, %26 : vector<64x32xf32>
    %28 = vector.extract_strided_slice %3 {offsets = [2, 0], sizes = [1, 32], strides = [1, 1]} : vector<3x32xf32> to vector<1x32xf32>
    %29 = vector.broadcast %28 : vector<1x32xf32> to vector<64x32xf32>
    %30 = arith.addf %27, %29 : vector<64x32xf32>
    %c0_10 = arith.constant 0 : index
    %c0_11 = arith.constant 0 : index
    %31 = vector.load %arg4[%c0_10, %c0_11] : memref<64x32xf32, #tpu.memory_space<vmem>>, vector<64x32xf32>
    tpu.vector_store %arg4[%c0_10, %c0_11], %30 {strides = array<i32>} : memref<64x32xf32, #tpu.memory_space<vmem>>, vector<64x32xf32>,
    return
  }
  func.func @transform_0(%arg0: i32) -> (i32, i32) {
    %c0_i32 = arith.constant 0 : i32
    %c0_i32_0 = arith.constant 0 : i32
    return %arg0, %c0_i32 : i32, i32
  }
  func.func @transform_1(%arg0: i32) -> (i32, i32) {
    %c0_i32 = arith.constant 0 : i32
    %c0_i32_0 = arith.constant 0 : i32
    %c0_i32_1 = arith.constant 0 : i32
    return %c0_i32, %c0_i32_0 : i32, i32
  }
  func.func @transform_2(%arg0: i32) -> (i32, i32) {
    %c0_i32 = arith.constant 0 : i32
    %c0_i32_0 = arith.constant 0 : i32
    %c0_i32_1 = arith.constant 0 : i32
    return %c0_i32, %c0_i32_0 : i32, i32
  }
  func.func @transform_3(%arg0: i32) -> (i32, i32) {
    %c0_i32 = arith.constant 0 : i32
    %c0_i32_0 = arith.constant 0 : i32
    return %arg0, %c0_i32 : i32, i32
  }
}

</mosaic_0001>

<bundles_post_ra>
// kernel: _lambda_.1
= control target key start
LH: loop header
LB: loop body
LE: loop exit
PB: predicated region body
PF: predicated region fallthrough
CT: control target
= control target key end

     0   :  { %8 = vsyncpa [#allocation3], 0  ;;  %s1095_s0 = inlined_call_operand.vmem [shape: bf16[128,128], index: 0, kind: input, shape index: {}]   ;;  %s1096_s1 = inlined_call_operand.vmem [shape: bf16[128,32], index: 1, kind: input, shape index: {}]   ;;  %s1097_s2 = inlined_call_operand.vmem [shape: f32[3,32], index: 2, kind: input, shape index: {}]   ;;  %s1098_s3 = inlined_call_operand.hbm [shape: f32[128,32], index: 3, kind: output, shape index: {}]  }
   0x1   :  { %10 = vsyncpa [#allocation3 + $0x1], 0  ;;  %s831_s12 = smov 0   ;;  %s833_s13 = smov 0  }
   0x2   :  { %s835_s14 = smov 0   ;;  %s837_s15 = smov 0  }
   0x3 LB: > { %s852_s16 = sadd.s32 4294967295, %s806_s15   ;;  %s587_s17 = sadd.s32 4294967294, %s806_s15   ;;  %s806_s15 = sphi %s837_s15, %s1104_s15   ;;  %s802_s14 = sphi %s835_s14, %s1103_s14   ;;  %s798_s13 = sphi %s833_s13, %s1102_s13   ;;  %s794_s12 = sphi %s831_s12, %s1101_s12  }
   0x4   : > { %s856_s18 = sadd.s32 1, %s806_s15   ;;  %s91_s19 = sadd.s32 1, %s802_s14 }
   0x5   : > { %s88_s20 = ssub.s32 %s806_s15, %s856_s18  ;;  %p101_p0 = scmp.ne.s32.totalorder %s802_s14, %s798_s13 }
   0x6   : > { %p89_p1 = scmp.eq.s32.totalorder %s88_s20, 0  ;;  %p102_p2 = scmp.eq.s32.totalorder %s852_s16, 1 }
   0x7   : > { %p107_p3 = scmp.ne.s32.totalorder %s798_s13, %s794_s12  ;;  %p108_p4 = scmp.eq.s32.totalorder %s587_s17, 1 }
   0x8   : > { %s867_s21 = scalar_select %p89_p1, %s802_s14, %s91_s19  }
   0x9   : > { %p869_p5 = por %p102_p2, %p101_p0  ;;  %p873_p6 = por %p108_p4, %p107_p3 }
   0xa   : > { %p590_p7 = scmp.ge.s32.totalorder %s806_s15, 1  ;;  %p141_p8 = scmp.lt.s32.totalorder %s806_s15, 3 }
   0xc   : > { %p142_p9 = pnand %p590_p7, %p141_p8 }
   0xd   : > { %s592_s5 = sshll.u32 (!%p142_p9), %s852_s16, 3  ;;  %s162_s29 = sand.u32 (!%p142_p9), 1, %s798_s13  }
   0xe   : > { %145 = sbr.rel (%p142_p9) target bundleno = 474 (0x1da), region = 32  ;;  %p166_p10 = scmp.lt.s32.totalorder (!%p142_p9), %s592_s5, 15 }
   0xf   : > { %s591_s30 = sshll.u32 (!%p142_p9), %s162_s29, 6  ;;  %s510_s10 = scalar_lea.sflag (!%p142_p9), [#allocation3], %s162_s29 }
  0x10   : > { %s1017_s4 = scalar_lea.vmem (!%p142_p9), [#allocation2], %s591_s30  ;;  %s764_s24 = scalar_lea.hbm (!%p142_p9), %s1098_s3, 128 }
  0x13   : > { %v658_v0 = vld [vmem:[%s1096_s1 + $0x38] sm:$0xff]  ;;  %v657_v1 = vld [vmem:[%s1096_s1 + $0x30] sm:$0xff]  ;;  %v656_v2 = vld [vmem:[%s1096_s1 + $0x28] sm:$0xff]  ;;  %s1106_s5 = smov (!%p166_p10, %s592_s5), 15  ;;  %vm299_vm0 = vcmask 261120   ;;  %v808_v38 = vmov 32.0  }
  0x14   : > { %270 = vmatpush.bf16.msra.mxu0 %v658_v0  ;;  %660 = vmatpush.bf16.msra.mxu1 %v658_v0  ;;  %v655_v3 = vld [vmem:[%s1096_s1 + $0x20] sm:$0xff]  ;;  %v654_v4 = vld [vmem:[%s1096_s1 + $0x18] sm:$0xff]  ;;  %v653_v5 = vld [vmem:[%s1096_s1 + $0x10] sm:$0xff]  ;;  %s593_s17 = sshll.u32 %s1106_s5, 2  ;;  %726 = vrcp.f32 %v808_v38  ;;  %s659_s5 = sshll.u32 %s852_s16, 6 }
  0x15   : > { %661 = vmatpush.bf16.msra.mxu2 %v658_v0  ;;  %662 = vmatpush.bf16.msra.mxu3 %v658_v0  ;;  %v652_v6 = vld [vmem:[%s1096_s1 + $0x8] sm:$0xff]  ;;  %v651_v7 = vld [vmem:[%s1096_s1] sm:$0xff]  ;;  %s169_s26 = scalar_lea.vmem %s1095_s0, %s593_s17  ;;  %s521_s8 = scalar_lea.hbm %s1098_s3, %s659_s5 }
  0x16   : > { %v647_v8 = vld [vmem:[%s169_s26] sm:$0xff]  ;;  %v648_v9 = vld [vmem:[%s169_s26 + $0x8] sm:$0xff]  ;;  %v649_v10 = vld [vmem:[%s169_s26 + $0x10] sm:$0xff]  ;;  %s522_s16 = sshll.u32 %s1017_s4, 4  ;;  %s524_s9 = sshll.u32 %s521_s8, 4  ;;  %s523_s16 = int_to_ptr.vmem [resolvable:$true] %s522_s16  ;;  %s525_s9 = int_to_ptr.hbm [resolvable:$true] %s524_s9 }
  0x17   : > { %v650_v11 = vld [vmem:[%s169_s26 + $0x18] sm:$0xff]  ;;  %v910_v12 = vld [vmem:[%s1097_s2] sm:$0x7]  ;;  %s758_s11 = sshra.s32 %s525_s9, 4  ;;  %s759_s11 = int_to_ptr.hbm [resolvable:$true] %s758_s11 }
  0x18   : > { %271 = vmatpush.bf16.msra.mxu0 %v657_v1  ;;  %663 = vmatpush.bf16.msra.mxu1 %v657_v1  ;;  %v197_v13 = vperm.slane %v910_v12, 0  ;;  %s760_s17 = scalar_lea.hbm %s759_s11, 64  ;;  %p765_p0 = scmp.lt.s32.totalorder %s759_s11, %s1098_s3 }
  0x19   : > { %664 = vmatpush.bf16.msra.mxu2 %v657_v1  ;;  %665 = vmatpush.bf16.msra.mxu3 %v657_v1  ;;  %p761_p11 = scmp.ne.s32.totalorder %s759_s11, %s760_s17  ;;  %p766_p1 = scmp.lt.s32.totalorder %s764_s24, %s760_s17 }
  0x1a   : > { %v727_v39 = vpop.eup %726 }
  0x1b   : > { %v325_v40 = vmul.f32 32.0, %v727_v39  ;;  %vm329_vm1 = vweird.f32 %v727_v39  ;;  %p762_p12 = pnand %p761_p11, %p869_p5  ;;  %p767_p2 = por %p766_p1, %p765_p0 }
  0x1c   : > { %272 = vmatpush.bf16.msra.mxu0 %v656_v2  ;;  %666 = vmatpush.bf16.msra.mxu1 %v656_v2 }
  0x1d   : > { %667 = vmatpush.bf16.msra.mxu2 %v656_v2  ;;  %668 = vmatpush.bf16.msra.mxu3 %v656_v2  ;;  %v326_v41 = vsub.f32 1.0, %v325_v40  ;;  %p763_p13 = pneg %p762_p12 }
  0x1f   : > { %v327_v42 = vmul.f32 %v727_v39, %v326_v41  ;;  %p768_p3 = pnand %p767_p2, %p763_p13 }
  0x20   : > { %273 = vmatpush.bf16.msra.mxu0 %v655_v3  ;;  %669 = vmatpush.bf16.msra.mxu1 %v655_v3 }
  0x21   : > { %670 = vmatpush.bf16.msra.mxu2 %v655_v3  ;;  %671 = vmatpush.bf16.msra.mxu3 %v655_v3  ;;  %v328_v43 = vadd.f32 %v727_v39, %v327_v42 }
  0x23   : > { %v921_v44 = vsel %vm329_vm1, %v727_v39, %v328_v43 }
  0x24   : > { %274 = vmatpush.bf16.msra.mxu0 %v654_v4  ;;  %672 = vmatpush.bf16.msra.mxu1 %v654_v4 }
  0x25   : > { %673 = vmatpush.bf16.msra.mxu2 %v654_v4  ;;  %674 = vmatpush.bf16.msra.mxu3 %v654_v4 }
  0x28   : > { %275 = vmatpush.bf16.msra.mxu0 %v653_v5  ;;  %675 = vmatpush.bf16.msra.mxu1 %v653_v5 }
  0x29   : > { %676 = vmatpush.bf16.msra.mxu2 %v653_v5  ;;  %677 = vmatpush.bf16.msra.mxu3 %v653_v5 }
  0x2c   : > { %276 = vmatpush.bf16.msra.mxu0 %v652_v6  ;;  %678 = vmatpush.bf16.msra.mxu1 %v652_v6 }
  0x2d   : > { %679 = vmatpush.bf16.msra.mxu2 %v652_v6  ;;  %680 = vmatpush.bf16.msra.mxu3 %v652_v6 }
  0x30   : > { %277 = vmatpush.bf16.msra.mxu0 %v651_v7  ;;  %681 = vmatpush.bf16.msra.mxu1 %v651_v7 }
  0x31   : > { %682 = vmatpush.bf16.msra.mxu2 %v651_v7  ;;  %683 = vmatpush.bf16.msra.mxu3 %v651_v7 }
  0x33   : > { %278 = vmatmul.bf16.vlgmr.msra.gmra.mxu0 %v647_v8  ;;  %283 = vmatmul.bf16.vlgmr.msra.gmra.mxu1 %v648_v9 }
  0x34   : > { %288 = vmatmul.bf16.vlgmr.msra.gmra.mxu2 %v649_v10  ;;  %293 = vmatmul.bf16.vlgmr.msra.gmra.mxu3 %v650_v11 }
  0xb0   : > { %v279_v14 = vpop.f32.mrf.mxu0  ;;  %v284_v15 = vpop.f32.mrf.mxu1 }
  0xb1   : > { %v280_v16 = vadd.f32 %v279_v14, %v197_v13  ;;  %v285_v17 = vadd.f32 %v284_v15, %v197_v13 }
  0xb3   : > { %v306_v18 = vsel %vm299_vm0, %v285_v17, 0.0  ;;  %v300_v19 = vsel %vm299_vm0, %v280_v16, 0.0 }
  0xb4   : > { %307 = vadd.xlane.f32.xlu1 %v306_v18  ;;  %301 = vadd.xlane.f32.xlu0 %v300_v19 }
  0xb7   : > { %v289_v20 = vpop.f32.mrf.mxu2  ;;  %v294_v21 = vpop.f32.mrf.mxu3 }
  0xb8   : > { %v290_v22 = vadd.f32 %v289_v20, %v197_v13  ;;  %v281_v23 = vpop.f32.mrf.mxu0  ;;  %v286_v24 = vpop.f32.mrf.mxu1  ;;  %v295_v30 = vadd.f32 %v294_v21, %v197_v13 }
  0xb9   : > { %v282_v25 = vadd.f32 %v281_v23, %v197_v13  ;;  %v287_v26 = vadd.f32 %v286_v24, %v197_v13 }
  0xba   : > { %v312_v27 = vsel %vm299_vm0, %v290_v22, 0.0  ;;  %v318_v37 = vsel %vm299_vm0, %v295_v30, 0.0 }
  0xbb   : > { %313 = vadd.xlane.f32.xlu2 %v312_v27  ;;  %v309_v28 = vsel %vm299_vm0, %v287_v26, 0.0  ;;  %v303_v29 = vsel %vm299_vm0, %v282_v25, 0.0 }
  0xbc   : > { %310 = vadd.xlane.f32.xlu1 %v309_v28  ;;  %304 = vadd.xlane.f32.xlu0 %v303_v29 }
  0xbf   : > { %v291_v31 = vpop.f32.mrf.mxu2  ;;  %v296_v32 = vpop.f32.mrf.mxu3 }
  0xc0   : > { %v292_v33 = vadd.f32 %v291_v31, %v197_v13  ;;  %v297_v34 = vadd.f32 %v296_v32, %v197_v13 }
  0xc2   : > { %v315_v35 = vsel %vm299_vm0, %v292_v33, 0.0  ;;  %v321_v36 = vsel %vm299_vm0, %v297_v34, 0.0 }
  0xc3   : > { %316 = vadd.xlane.f32.xlu2 %v315_v35 }
  0xc4   : > { %322 = vadd.xlane.f32.xlu1 %v321_v36  ;;  %319 = vadd.xlane.f32.xlu0 %v318_v37 }
 0x127   : > { %v308_v45 = vpop.xlane.xlu1 %307  ;;  %v302_v46 = vpop.xlane.xlu0 %301 }
 0x128   : > { %v333_v47 = vmul.f32 %v921_v44, %v308_v45  ;;  %v331_v48 = vmul.f32 %v921_v44, %v302_v46 }
 0x12a   : > { %v925_v49 = vsub.f32 %v285_v17, %v333_v47  ;;  %v927_v50 = vsub.f32 %v280_v16, %v331_v48  ;;  %v984_v47 = vperm.slane %v910_v12, 1 }
 0x12c   : > { %v349_v51 = vmul.f32 %v925_v49, %v925_v49  ;;  %v347_v52 = vmul.f32 %v927_v50, %v927_v50 }
 0x12e   : > { %v314_v53 = vpop.xlane.xlu2 %313  ;;  %v361_v54 = vsel %vm299_vm0, %v349_v51, 0.0  ;;  %v355_v55 = vsel %vm299_vm0, %v347_v52, 0.0 }
 0x12f   : > { %v335_v56 = vmul.f32 %v921_v44, %v314_v53  ;;  %362 = vadd.xlane.f32.xlu1 %v361_v54  ;;  %v311_v57 = vpop.xlane.xlu1 %310  ;;  %356 = vadd.xlane.f32.xlu2 %v355_v55  ;;  %v305_v58 = vpop.xlane.xlu0 %304 }
 0x130   : > { %v334_v59 = vmul.f32 %v921_v44, %v311_v57  ;;  %v332_v61 = vmul.f32 %v921_v44, %v305_v58 }
 0x131   : > { %v937_v60 = vsub.f32 %v290_v22, %v335_v56 }
 0x132   : > { %v940_v62 = vsub.f32 %v287_v26, %v334_v59  ;;  %v946_v1 = vsub.f32 %v282_v25, %v332_v61 }
 0x133   : > { %v351_v63 = vmul.f32 %v937_v60, %v937_v60 }
 0x134   : > { %v350_v0 = vmul.f32 %v940_v62, %v940_v62  ;;  %v348_v11 = vmul.f32 %v946_v1, %v946_v1 }
 0x135   : > { %v367_v2 = vsel %vm299_vm0, %v351_v63, 0.0 }
 0x136   : > { %v317_v3 = vpop.xlane.xlu2 %316  ;;  %368 = vadd.xlane.f32.xlu0 %v367_v2  ;;  %v364_v4 = vsel %vm299_vm0, %v350_v0, 0.0  ;;  %v358_v18 = vsel %vm299_vm0, %v348_v11, 0.0 }
 0x137   : > { %v336_v5 = vmul.f32 %v921_v44, %v317_v3  ;;  %v323_v6 = vpop.xlane.xlu1 %322  ;;  %365 = vadd.xlane.f32.xlu2 %v364_v4  ;;  %v320_v7 = vpop.xlane.xlu0 %319 }
 0x138   : > { %v337_v8 = vmul.f32 %v921_v44, %v320_v7  ;;  %v338_v10 = vmul.f32 %v921_v44, %v323_v6 }
 0x139   : > { %v952_v9 = vsub.f32 %v292_v33, %v336_v5  ;;  %v1000_v5 = vperm.slane %v910_v12, 2 }
 0x13a   : > { %v957_v13 = vsub.f32 %v295_v30, %v337_v8  ;;  %v963_v16 = vsub.f32 %v297_v34, %v338_v10 }
 0x13b   : > { %v352_v14 = vmul.f32 %v952_v9, %v952_v9 }
 0x13c   : > { %v353_v15 = vmul.f32 %v957_v13, %v957_v13  ;;  %v354_v20 = vmul.f32 %v963_v16, %v963_v16 }
 0x13d   : > { %v370_v17 = vsel %vm299_vm0, %v352_v14, 0.0 }
 0x13e   : > { %371 = vadd.xlane.f32.xlu1 %v370_v17  ;;  %359 = vadd.xlane.f32.xlu0 %v358_v18  ;;  %v373_v19 = vsel %vm299_vm0, %v353_v15, 0.0  ;;  %v376_v21 = vsel %vm299_vm0, %v354_v20, 0.0 }
 0x13f   : > { %374 = vadd.xlane.f32.xlu2 %v373_v19 }
 0x146   : > { %377 = vadd.xlane.f32.xlu0 %v376_v21 }
 0x1a2   : > { %v363_v22 = vpop.xlane.xlu1 %362  ;;  %v357_v23 = vpop.xlane.xlu2 %356 }
 0x1a3   : > { %v381_v24 = vmul.f32 %v363_v22, %v921_v44  ;;  %v379_v25 = vmul.f32 %v357_v23, %v921_v44 }
 0x1a5   : > { %v389_v26 = vadd.f32 1e-05, %v381_v24  ;;  %v387_v27 = vadd.f32 1e-05, %v379_v25 }
 0x1a7   : > { %728 = vrsqrt.f32 %v389_v26  ;;  %vm421_vm4 = vweird.f32 %v389_v26  ;;  %vm401_vm6 = vweird.f32 %v387_v27 }
 0x1a8   : > { %730 = vrsqrt.f32 %v387_v27 }
 0x1a9   : > { %v369_v28 = vpop.xlane.xlu0 %368 }
 0x1aa   : > { %v383_v29 = vmul.f32 %v369_v28, %v921_v44  ;;  %v366_v30 = vpop.xlane.xlu2 %365 }
 0x1ab   : > { %v382_v31 = vmul.f32 %v366_v30, %v921_v44 }
 0x1ac   : > { %v975_v32 = vadd.f32 1e-05, %v383_v29 }
 0x1ad   : > { %v729_v33 = vpop.eup %728  ;;  %v977_v34 = vadd.f32 1e-05, %v382_v31 }
 0x1ae   : > { %v731_v35 = vpop.eup %730  ;;  %v416_v36 = vmul.f32 %v729_v33, %v389_v26  ;;  %732 = vrsqrt.f32 %v975_v32  ;;  %vm422_vm2 = vweird.f32 %v729_v33  ;;  %vm441_vm10 = vweird.f32 %v975_v32 }
 0x1af   : > { %v396_v37 = vmul.f32 %v731_v35, %v387_v27  ;;  %734 = vrsqrt.f32 %v977_v34  ;;  %vm402_vm3 = vweird.f32 %v731_v35  ;;  %vm423_vm5 = vmor %vm421_vm4, %vm422_vm2  ;;  %vm431_vm12 = vweird.f32 %v977_v34 }
 0x1b0   : > { %v417_v38 = vmul.f32 %v729_v33, %v416_v36  ;;  %vm403_vm7 = vmor %vm401_vm6, %vm402_vm3 }
 0x1b1   : > { %v397_v39 = vmul.f32 %v731_v35, %v396_v37  ;;  %v372_v40 = vpop.xlane.xlu1 %371  ;;  %v360_v41 = vpop.xlane.xlu0 %359 }
 0x1b2   : > { %v418_v42 = vmul.f32 0.5, %v417_v38  ;;  %v384_v43 = vmul.f32 %v372_v40, %v921_v44  ;;  %v380_v45 = vmul.f32 %v360_v41, %v921_v44  ;;  %v375_v46 = vpop.xlane.xlu2 %374 }
 0x1b3   : > { %v398_v48 = vmul.f32 0.5, %v397_v39  ;;  %v385_v51 = vmul.f32 %v375_v46, %v921_v44 }
 0x1b4   : > { %v733_v52 = vpop.eup %732  ;;  %v419_v53 = vsub.f32 1.5, %v418_v42  ;;  %v987_v54 = vadd.f32 1e-05, %v384_v43  ;;  %v989_v55 = vadd.f32 1e-05, %v380_v45 }
 0x1b5   : > { %v735_v56 = vpop.eup %734  ;;  %v399_v57 = vsub.f32 1.5, %v398_v48  ;;  %v436_v58 = vmul.f32 %v733_v52, %v975_v32  ;;  %v992_v59 = vadd.f32 1e-05, %v385_v51  ;;  %vm442_vm8 = vweird.f32 %v733_v52 }
 0x1b6   : > { %v420_v61 = vmul.f32 %v729_v33, %v419_v53  ;;  %v426_v63 = vmul.f32 %v735_v56, %v977_v34  ;;  %736 = vrsqrt.f32 %v987_v54  ;;  %vm432_vm9 = vweird.f32 %v735_v56  ;;  %vm443_vm11 = vmor %vm441_vm10, %vm442_vm8 }
 0x1b7   : > { %v400_v0 = vmul.f32 %v731_v35, %v399_v57  ;;  %v437_v2 = vmul.f32 %v733_v52, %v436_v58  ;;  %738 = vrsqrt.f32 %v989_v55  ;;  %vm433_vm13 = vmor %vm431_vm12, %vm432_vm9  ;;  %vm451_vm15 = vweird.f32 %v987_v54 }
 0x1b8   : > { %v424_v3 = vsel %vm423_vm5, %v729_v33, %v420_v61  ;;  %v427_v4 = vmul.f32 %v735_v56, %v426_v63  ;;  %740 = vrsqrt.f32 %v992_v59  ;;  %vm411_vm4 = vweird.f32 %v989_v55 }
 0x1b9   : > { %v477_v6 = vmul.f32 %v424_v3, %v925_v49  ;;  %v404_v7 = vsel %vm403_vm7, %v731_v35, %v400_v0  ;;  %v438_v8 = vmul.f32 0.5, %v437_v2  ;;  %v378_v10 = vpop.xlane.xlu0 %377  ;;  %vm461_vm6 = vweird.f32 %v992_v59 }
 0x1ba   : > { %v475_v11 = vmul.f32 %v404_v7, %v927_v50  ;;  %v428_v14 = vmul.f32 0.5, %v427_v4  ;;  %v386_v15 = vmul.f32 %v378_v10, %v921_v44 }
 0x1bb   : > { %v486_v17 = vmul.f32 %v984_v47, %v477_v6  ;;  %v439_v18 = vsub.f32 1.5, %v438_v8 }
 0x1bc   : > { %v737_v19 = vpop.eup %736  ;;  %v484_v12 = vmul.f32 %v984_v47, %v475_v11  ;;  %v429_v20 = vsub.f32 1.5, %v428_v14  ;;  %v1009_v21 = vadd.f32 1e-05, %v386_v15 }
 0x1bd   : > { %v739_v49 = vpop.eup %738  ;;  %v495_v22 = vadd.f32 %v1000_v5, %v486_v17  ;;  %v440_v23 = vmul.f32 %v733_v52, %v439_v18  ;;  %v446_v50 = vmul.f32 %v737_v19, %v987_v54  ;;  %vm452_vm14 = vweird.f32 %v737_v19 }
 0x1be   : > { %v741_v44 = vpop.eup %740  ;;  %v493_v24 = vadd.f32 %v1000_v5, %v484_v12  ;;  %v430_v25 = vmul.f32 %v735_v56, %v429_v20  ;;  %v406_v26 = vmul.f32 %v739_v49, %v989_v55  ;;  %742 = vrsqrt.f32 %v1009_v21  ;;  %vm453_vm3 = vmor %vm451_vm15, %vm452_vm14 }
 0x1bf   : > { %503 = vst.msk [vmem:[%s1017_s4 + $0x10] sm:$0xff] %vm299_vm0, %v495_v22  ;;  %v444_v27 = vsel %vm443_vm11, %v733_v52, %v440_v23  ;;  %v447_v28 = vmul.f32 %v737_v19, %v446_v50  ;;  %v456_v29 = vmul.f32 %v741_v44, %v992_v59  ;;  %vm412_vm1 = vweird.f32 %v739_v49 }
 0x1c0   : > { %501 = vst.msk [vmem:[%s1017_s4] sm:$0xff] %vm299_vm0, %v493_v24  ;;  %v479_v30 = vmul.f32 %v444_v27, %v937_v60  ;;  %v434_v31 = vsel %vm433_vm13, %v735_v56, %v430_v25  ;;  %v407_v32 = vmul.f32 %v739_v49, %v406_v26  ;;  %vm462_vm2 = vweird.f32 %v741_v44  ;;  %vm413_vm5 = vmor %vm411_vm4, %vm412_vm1 }
 0x1c1   : > { %v478_v33 = vmul.f32 %v434_v31, %v940_v62  ;;  %v448_v34 = vmul.f32 0.5, %v447_v28  ;;  %v457_v35 = vmul.f32 %v741_v44, %v456_v29  ;;  %vm463_vm7 = vmor %vm461_vm6, %vm462_vm2  ;;  %vm471_vm9 = vweird.f32 %v1009_v21 }
 0x1c2   : > { %v488_v36 = vmul.f32 %v984_v47, %v479_v30  ;;  %v408_v37 = vmul.f32 0.5, %v407_v32 }
 0x1c3   : > { %v487_v38 = vmul.f32 %v984_v47, %v478_v33  ;;  %v449_v39 = vsub.f32 1.5, %v448_v34  ;;  %v458_v40 = vmul.f32 0.5, %v457_v35 }
 0x1c4   : > { %v497_v60 = vadd.f32 %v1000_v5, %v488_v36  ;;  %v409_v41 = vsub.f32 1.5, %v408_v37  ;;  %v743_v45 = vpop.eup %742 }
 0x1c5   : > { %v496_v62 = vadd.f32 %v1000_v5, %v487_v38  ;;  %v450_v42 = vmul.f32 %v737_v19, %v449_v39  ;;  %v459_v43 = vsub.f32 1.5, %v458_v40  ;;  %v466_v52 = vmul.f32 %v743_v45, %v1009_v21 }
 0x1c6   : > { %505 = vst.msk [vmem:[%s1017_s4 + $0x20] sm:$0xff] %vm299_vm0, %v497_v60  ;;  %v410_v46 = vmul.f32 %v739_v49, %v409_v41  ;;  %vm472_vm8 = vweird.f32 %v743_v45 }
 0x1c7   : > { %504 = vst.msk [vmem:[%s1017_s4 + $0x18] sm:$0xff] %vm299_vm0, %v496_v62  ;;  %v454_v48 = vsel %vm453_vm3, %v737_v19, %v450_v42  ;;  %v460_v51 = vmul.f32 %v741_v44, %v459_v43  ;;  %v467_v55 = vmul.f32 %v743_v45, %v466_v52  ;;  %vm473_vm10 = vmor %vm471_vm9, %vm472_vm8 }
 0x1c8   : > { %v480_v53 = vmul.f32 %v454_v48, %v952_v9  ;;  %v414_v54 = vsel %vm413_vm5, %v739_v49, %v410_v46 }
 0x1c9   : > { %v476_v56 = vmul.f32 %v414_v54, %v946_v1  ;;  %v464_v57 = vsel %vm463_vm7, %v741_v44, %v460_v51  ;;  %v468_v59 = vmul.f32 0.5, %v467_v55 }
 0x1ca   : > { %v489_v58 = vmul.f32 %v984_v47, %v480_v53  ;;  %v481_v61 = vmul.f32 %v464_v57, %v957_v13 }
 0x1cb   : > { %v485_v63 = vmul.f32 %v984_v47, %v476_v56  ;;  %v469_v3 = vsub.f32 1.5, %v468_v59 }
 0x1cc   : > { %v498_v0 = vadd.f32 %v1000_v5, %v489_v58  ;;  %v490_v9 = vmul.f32 %v984_v47, %v481_v61 }
 0x1cd   : > { %v494_v2 = vadd.f32 %v1000_v5, %v485_v63  ;;  %v470_v13 = vmul.f32 %v743_v45, %v469_v3 }
 0x1ce   : > { %506 = vst.msk [vmem:[%s1017_s4 + $0x28] sm:$0xff] %vm299_vm0, %v498_v0  ;;  %v499_v1 = vadd.f32 %v1000_v5, %v490_v9 }
 0x1cf   : > { %502 = vst.msk [vmem:[%s1017_s4 + $0x8] sm:$0xff] %vm299_vm0, %v494_v2  ;;  %v474_v4 = vsel %vm473_vm10, %v743_v45, %v470_v13 }
 0x1d0   : > { %507 = vst.msk [vmem:[%s1017_s4 + $0x30] sm:$0xff] %vm299_vm0, %v499_v1  ;;  %v482_v6 = vmul.f32 %v474_v4, %v963_v16 }
 0x1d2   : > { %v491_v7 = vmul.f32 %v984_v47, %v482_v6 }
 0x1d4   : > { %v500_v8 = vadd.f32 %v1000_v5, %v491_v7 }
 0x1d6   : > { %508 = vst.msk [vmem:[%s1017_s4 + $0x38] sm:$0xff] %vm299_vm0, %v500_v8 }
 0x1d7   : > { %771 = shalt.err (!%p768_p3)
}
 0x1d8   : > { %s809_s27 = smov 128   ;;  %s810_s28 = smov 8  }
 0x1d9   : > { %684 = dma.vmem_to_hbm [thread:$0]  (%p869_p5), %s523_s16, 1024, %s525_s9, %s510_s10, %s809_s27, %s809_s27, %s810_s28  }
 0x1da PF: > { %p690_p4 = scmp.ge.s32.totalorder %s806_s15, 2  ;;  %s539_s29 = sand.u32 1, %s794_s12  }
 0x1db   : > { %s540_s30 = scalar_lea.sflag [#allocation3], %s539_s29 }
 0x1dc   : > { %p687_p7 = pnand %p690_p4, %p873_p6 }
 0x1de   : > { %p688_p8 = pneg %p687_p7 }
 0x1e0   : > { %789 = dma.done.wait (%p688_p8), %s540_s30, 1024  }
 0x1e1   : > { %791 = vsyncadd (%p688_p8), %s540_s30, 4294966272  ;;  %p13_p9 = scmp.ge.s32.totalorder %s856_s18, 4   ;;  %s1101_s12 = smov %s798_s13 }
 0x1e2   : > { %s1102_s13 = smov %s802_s14  ;;  %s1103_s14 = smov %s867_s21 }
 0x1e3   : > { %s1104_s15 = smov %s856_s18  ;;  %15 = sbr.rel (!%p13_p9) target bundleno = 3 (0x3), region = 67 }
 0x1e8   :  { %546 = vsyncpa [#allocation3], 1 }
 0x1e9   :  { %548 = vsyncpa [#allocation3 + $0x1], 1 }

</bundles_post_ra>
